<compile_context>
chip_gen: v5e
topology: v5e:2x2
jax: 0.10.0
libtpu: 0.0.40
codegen_flags: <defaults>
</compile_context>

<pallas_src>
import functools
import numpy as np
import jax
import jax.numpy as jnp
from jax.experimental import pallas as pl
from jax.experimental.pallas import tpu as pltpu


def _round_up(x, m):
    return (x + m - 1) // m * m


def _kernel_size(f):
    return {2: 3, 3: 5}[f]


def _padding(f):
    return {2: 1, 3: 2}[f]


# ------------------------------ Pallas kernel -------------------------------

def _upconv_kernel(x_ref, w_ref, b_ref, o_ref):
    """One (batch, row-block, column-block) tile: out = bias + x @ w.

    x_ref: (tm, 8*Cin)  row block of tap-packed input (rows = (d, h, w)).
    w_ref: (8*Cin, tn)  phase-packed weight block.
    b_ref: (1, tn)      phase-tiled bias (lane padded to a multiple of 128).
    o_ref: (tm, tn)     f32 output block (single write, no RMW, no init pass).
    """
    o_ref[...] = b_ref[...] + jnp.dot(x_ref[...], w_ref[...],
                                      preferred_element_type=jnp.float32)


# --------------------------- weight preparation ------------------------------

def prepare_up_params(wt, bias, factors):
    """Pack a torch ConvTranspose3d weight into sub-pixel (phase) matmul form.

    wt:   (Cin, Cout, kD, kH, kW)   torch ConvTranspose3d layout.
    bias: (Cout,)

    Returns:
      w_all: (8*Cin, Np_pad)  rows = (od, oh, ow, cin) taps with (od,oh,ow) in
                              {0,1}^3; cols = (rd, rh, rw, cout) phases, lane
                              padded to a multiple of 128.
      b_all: (1, Np_pad)      phase-tiled bias, lane padded.
    """
    assert all(f in (2, 3) for f in factors), factors
    Cin, Cout = int(wt.shape[0]), int(wt.shape[1])
    sd, sh, sw = factors
    P = sd * sh * sw
    Np = P * Cout
    Np_pad = _round_up(Np, 128)

    def dim_taps(s):
        k = 2 * s - 1
        # tap index t = r + (s-1) - o*s for output phase r and input offset o.
        t = np.array([[r + (s - 1) - o * s for r in range(s)] for o in (0, 1)])
        valid = (t >= 0) & (t < k)
        return np.clip(t, 0, k - 1), valid.astype(np.float32)

    td, vd = dim_taps(sd)
    th, vh = dim_taps(sh)
    tw, vw = dim_taps(sw)

    # Gather per-(offset, phase) taps -> (Cin, Cout, od, rd, oh, rh, ow, rw)
    wsel = wt[:, :, td, :, :]              # (Cin, Cout, 2, sd, kH, kW)
    wsel = wsel[:, :, :, :, th, :]         # (Cin, Cout, 2, sd, 2, sh, kW)
    wsel = wsel[:, :, :, :, :, :, tw]      # (Cin, Cout, 2, sd, 2, sh, 2, sw)
    mask = (vd[None, None, :, :, None, None, None, None]
            * vh[None, None, None, None, :, :, None, None]
            * vw[None, None, None, None, None, None, :, :])
    wsel = wsel * mask
    # -> (od, oh, ow, Cin, rd, rh, rw, Cout); row order matches x_packed channels.
    wsel = jnp.transpose(wsel, (2, 4, 6, 0, 3, 5, 7, 1))
    w_all = wsel.reshape(8 * Cin, Np)
    w_all = jnp.pad(w_all, ((0, 0), (0, Np_pad - Np)))

    b_all = jnp.pad(jnp.tile(bias, P), (0, Np_pad - Np)).reshape(1, Np_pad)
    return w_all.astype(jnp.float32), b_all.astype(jnp.float32)


# ------------------------------ tile selection --------------------------------

def _pick_tiles(m_total, nb, k8, np_pad):
    """Keep the double-buffered block set under ~12 MiB (fits v5e's default
    scoped VMEM, ample headroom on v6e/v7x) while saturating the MXU."""
    budget = 12 * 2 ** 20

    def bytes_needed(tm, tn):
        # double-buffered x, out, w, bias blocks (f32 upper bound)
        return 8 * (tm * k8 + tm * tn + k8 * tn + tn)

    # Prefer a single column block (tn = Np_pad): x / w / bias blocks are then
    # never re-fetched across the inner grid.
    tn = next((c for c in (np_pad, 2048, 1024, 512, 256, 128)
               if c <= np_pad and np_pad % c == 0 and bytes_needed(8, c) <= budget),
              128)
    m8 = _round_up(m_total, 8)
    tm = next((c for c in (1024, 512, 256, 128, 64, 32, 16, 8)
               if c <= m8 and bytes_needed(c, tn) <= budget), 8)
    # Keep >= 2 parallel grid steps so both v7x TensorCores get work.
    while nb * ((m8 + tm - 1) // tm) < 2 and tm > 8:
        tm //= 2
    return tm, tn


# -------------------------------- forward ------------------------------------

@functools.partial(jax.jit, static_argnames=("out_ch", "factors", "compute_dtype"))
def variable_up_step_3d(x_ncdhw, w_all, b_all, *, out_ch, factors,
                        compute_dtype=jnp.float32):
    """Forward of VariableUpStep3D: exact ConvTranspose3d upsampling (NCDHW io)."""
    sd, sh, sw = factors
    P = sd * sh * sw
    Np = P * out_ch
    Np_pad = w_all.shape[1]
    Cin = w_all.shape[0] // 8

    Nb, cin_x, D, H, W = x_ncdhw.shape
    assert cin_x == Cin, (cin_x, Cin)
    M = D * H * W
    K8 = 8 * Cin

    # NCDHW -> NDHWC (channels on the 128-lane axis) + zero halo of 1 at the end
    # of every spatial dim (covers the "+1" sub-pixel taps at the boundary).
    x = jnp.transpose(x_ncdhw, (0, 2, 3, 4, 1))
    xp = jnp.pad(x, ((0, 0), (0, 1), (0, 1), (0, 1), (0, 0)))

    # Pre-pack all (od, oh, ow) in {0,1}^3 tap triples along channels (one copy,
    # ~8x the *input* size, still <= output size) so the whole transposed conv
    # is one dense matmul per row block: K = 8*Cin, no reduction grid axis.
    parts = [xp[:, od:od + D, oh:oh + H, ow:ow + W, :]
             for od in (0, 1) for oh in (0, 1) for ow in (0, 1)]
    x_packed = jnp.concatenate(parts, axis=-1).reshape(Nb, M, K8)

    tm, tn = _pick_tiles(M, Nb, K8, Np_pad)
    M_pad = _round_up(M, tm)
    if M_pad != M:
        x_packed = jnp.pad(x_packed, ((0, 0), (0, M_pad - M), (0, 0)))

    x_packed = x_packed.astype(compute_dtype)
    w_mm = w_all.astype(compute_dtype)

    out = pl.pallas_call(
        _upconv_kernel,
        out_shape=jax.ShapeDtypeStruct((Nb, M_pad, Np_pad), jnp.float32),
        grid=(Nb, M_pad // tm, Np_pad // tn),
        in_specs=[
            # Tap-packed input row block (rows = flattened (d, h, w)).
            pl.BlockSpec((None, tm, K8), lambda n, i, j: (n, i, 0)),
            # Phase-packed weight block (constant across n, i).
            pl.BlockSpec((K8, tn), lambda n, i, j: (0, j)),
            # Phase-tiled bias row.
            pl.BlockSpec((1, tn), lambda n, i, j: (0, j)),
        ],
        out_specs=pl.BlockSpec((None, tm, tn), lambda n, i, j: (n, i, j)),
        compiler_params=pltpu.CompilerParams(
            dimension_semantics=("parallel", "parallel", "parallel")),
    )(x_packed, w_mm, b_all)

    # Un-phase: slice away pad rows / pad lanes *before* the transpose so dead
    # lanes are never re-read, then interleave phases back to NCDHW.
    # TODO(synk): fold this un-interleave into the kernel (strided per-tile
    #             stores) to remove ~2x output HBM traffic; left as wrapper glue.
    out = out[:, :M, :Np].reshape(Nb, D, H, W, sd, sh, sw, out_ch)
    out = jnp.transpose(out, (0, 7, 1, 4, 2, 5, 3, 6))
    return out.reshape(Nb, out_ch, D * sd, H * sh, W * sw)


# --------------------------- init & pure-JAX reference -----------------------

def init_params(key, in_ch, out_ch, factors):
    """torch-style default init for ConvTranspose3d (weight (Cin, Cout, kD,kH,kW))."""
    ks = tuple(_kernel_size(f) for f in factors)
    fan_in = out_ch * int(np.prod(ks))
    bound = 1.0 / np.sqrt(fan_in)
    kw, kb = jax.random.split(key)
    wt = jax.random.uniform(kw, (in_ch, out_ch) + ks, jnp.float32, -bound, bound)
    b = jax.random.uniform(kb, (out_ch,), jnp.float32, -bound, bound)
    return wt, b


def conv_transpose3d_ref(x, wt, b, factors):
    """Reference: ConvTranspose3d == lhs-dilated conv with flipped/swapped weight."""
    strides = tuple(int(f) for f in factors)
    ks = tuple(_kernel_size(f) for f in factors)
    pads = tuple(_padding(f) for f in factors)
    opads = pads
    w_conv = jnp.transpose(jnp.flip(wt, axis=(2, 3, 4)), (1, 0, 2, 3, 4))
    pad_cfg = [(k - 1 - p, k - 1 - p + op) for k, p, op in zip(ks, pads, opads)]
    y = jax.lax.conv_general_dilated(
        x, w_conv, window_strides=(1, 1, 1), padding=pad_cfg,
        lhs_dilation=strides, rhs_dilation=(1, 1, 1),
        dimension_numbers=("NCDHW", "OIDHW", "NCDHW"),
        precision=jax.lax.Precision.HIGHEST)
    return y + b.reshape(1, -1, 1, 1, 1)


# ----------------------------------- main ------------------------------------

if __name__ == "__main__":
    key = jax.random.PRNGKey(0)

    cases = [
        # (batch, in_ch, out_ch, (D, H, W), upsample_factors)
        (2, 16, 16, (8, 8, 8), (2, 2, 2)),
        (1, 8, 8, (4, 4, 4), (3, 2, 2)),
    ]

    for nb, cin, cout, (d, h, w), factors in cases:
        key, kp, kx = jax.random.split(key, 3)
        wt, b = init_params(kp, cin, cout, factors)
        w_all, b_all = prepare_up_params(wt, b, factors)
        x = jax.random.normal(kx, (nb, cin, d, h, w), jnp.float32)

        y = variable_up_step_3d(x, w_all, b_all, out_ch=cout, factors=factors)
        y = jax.block_until_ready(y)

        sd, sh, sw = factors
        assert y.shape == (nb, cout, d * sd, h * sh, w * sw), y.shape
        assert bool(jnp.all(jnp.isfinite(y)))

        y_ref = conv_transpose3d_ref(x, wt, b, factors)
        err = float(jnp.max(jnp.abs(y - y_ref)))
        scale = float(jnp.max(jnp.abs(y_ref)))
        assert err <= 3e-3 * max(1.0, scale), ("mismatch", factors, err, scale)

    # Optional bf16 activation/weight path (v6e/v7x peak-MXU lever), f32 accumulate.
    nb, cin, cout, (d, h, w), factors = cases[0]
    wt, b = init_params(jax.random.PRNGKey(1), cin, cout, factors)
    w_all, b_all = prepare_up_params(wt, b, factors)
    x = jax.random.normal(jax.random.PRNGKey(2), (nb, cin, d, h, w), jnp.float32)
    y_bf = variable_up_step_3d(x, w_all, b_all, out_ch=cout, factors=factors,
                               compute_dtype=jnp.bfloat16)
    y_bf = jax.block_until_ready(y_bf)
    y_ref = conv_transpose3d_ref(x, wt, b, factors)
    err = float(jnp.max(jnp.abs(y_bf - y_ref)))
    scale = float(jnp.max(jnp.abs(y_ref)))
    assert err <= 5e-2 * max(1.0, scale), ("bf16 mismatch", err, scale)

    print("KERNEL_OK")
</pallas_src>

<mosaic_0001>
module attributes {stable_mosaic.version = 11 : i64} {
  func.func @_upconv_kernel(%arg0: i32, %arg1: i32, %arg2: i32, %arg3: memref<1x512x128xf32, #tpu.memory_space<vmem>>, %arg4: memref<128x128xf32, #tpu.memory_space<vmem>>, %arg5: memref<1x128xf32, #tpu.memory_space<vmem>>, %arg6: memref<1x512x128xf32, #tpu.memory_space<vmem>>) attributes {dimension_semantics = [#tpu.dimension_semantics<parallel>, #tpu.dimension_semantics<parallel>, #tpu.dimension_semantics<parallel>], iteration_bounds = array<i64: 2, 1, 1>, scalar_prefetch = 0 : i64, scratch_operands = 0 : i64, tpu.core_type = #tpu.core_type<tc>, window_params = [{transform_indices = @transform_0, window_bounds = array<i64: 1, 512, 128>}, {transform_indices = @transform_1, window_bounds = array<i64: 128, 128>}, {transform_indices = @transform_2, window_bounds = array<i64: 1, 128>}, {transform_indices = @transform_3, window_bounds = array<i64: 1, 512, 128>}]} {
    %c0 = arith.constant 0 : index
    %c0_0 = arith.constant 0 : index
    %0 = vector.load %arg5[%c0, %c0_0] : memref<1x128xf32, #tpu.memory_space<vmem>>, vector<1x128xf32>
    %c0_1 = arith.constant 0 : index
    %c0_2 = arith.constant 0 : index
    %c0_3 = arith.constant 0 : index
    %1 = vector.load %arg3[%c0_1, %c0_2, %c0_3] : memref<1x512x128xf32, #tpu.memory_space<vmem>>, vector<1x512x128xf32>
    %2 = vector.shape_cast %1 : vector<1x512x128xf32> to vector<512x128xf32>
    %c0_4 = arith.constant 0 : index
    %c0_5 = arith.constant 0 : index
    %3 = vector.load %arg4[%c0_4, %c0_5] : memref<128x128xf32, #tpu.memory_space<vmem>>, vector<128x128xf32>
    %cst = arith.constant dense<0.000000e+00> : vector<512x128xf32>
    %4 = tpu.matmul %2, %3, %cst {dimension_numbers = #tpu.dot_dimension_numbers<[1], [0], [0], [1], [0, 0, 1, 1], [], []>} : vector<512x128xf32>, vector<128x128xf32>, vector<512x128xf32> -> vector<512x128xf32>
    %5 = vector.broadcast %0 : vector<1x128xf32> to vector<512x128xf32>
    %6 = arith.addf %5, %4 : vector<512x128xf32>
    %c0_6 = arith.constant 0 : index
    %c0_7 = arith.constant 0 : index
    %c0_8 = arith.constant 0 : index
    %7 = vector.load %arg6[%c0_6, %c0_7, %c0_8] : memref<1x512x128xf32, #tpu.memory_space<vmem>>, vector<1x512x128xf32>
    %8 = vector.shape_cast %7 : vector<1x512x128xf32> to vector<512x128xf32>
    %9 = vector.shape_cast %6 : vector<512x128xf32> to vector<1x512x128xf32>
    tpu.vector_store %arg6[%c0_6, %c0_7, %c0_8], %9 {strides = array<i32>} : memref<1x512x128xf32, #tpu.memory_space<vmem>>, vector<1x512x128xf32>,
    return
  }
  func.func @transform_0(%arg0: i32, %arg1: i32, %arg2: i32) -> (i32, i32, i32) {
    %c0_i32 = arith.constant 0 : i32
    %c0_i32_0 = arith.constant 0 : i32
    return %arg0, %arg1, %c0_i32 : i32, i32, i32
  }
  func.func @transform_1(%arg0: i32, %arg1: i32, %arg2: i32) -> (i32, i32) {
    %c0_i32 = arith.constant 0 : i32
    %c0_i32_0 = arith.constant 0 : i32
    return %c0_i32, %arg2 : i32, i32
  }
  func.func @transform_2(%arg0: i32, %arg1: i32, %arg2: i32) -> (i32, i32) {
    %c0_i32 = arith.constant 0 : i32
    %c0_i32_0 = arith.constant 0 : i32
    return %c0_i32, %arg2 : i32, i32
  }
  func.func @transform_3(%arg0: i32, %arg1: i32, %arg2: i32) -> (i32, i32, i32) {
    %c0_i32 = arith.constant 0 : i32
    return %arg0, %arg1, %arg2 : i32, i32, i32
  }
}

</mosaic_0001>

<bundles_post_ra>
// kernel: variable_up_step_3d.1
= control target key start
LH: loop header
LB: loop body
LE: loop exit
PB: predicated region body
PF: predicated region fallthrough
CT: control target
= control target key end

     0   :  { %s936_s12 = smov 0   ;;  %s938_s13 = smov 0   ;;  %s1229_s0 = inlined_call_operand.vmem [shape: f32[2,512,128], index: 0, kind: input, shape index: {}]   ;;  %s1230_s1 = inlined_call_operand.vmem [shape: f32[128,128], index: 1, kind: input, shape index: {}]   ;;  %s1231_s2 = inlined_call_operand.vmem [shape: f32[1,128], index: 2, kind: input, shape index: {}]   ;;  %s1232_s3 = inlined_call_operand.vmem [shape: f32[2,512,128], index: 3, kind: output, shape index: {}]  }
   0x1   :  { %s940_s14 = smov 0  }
   0x2 LB: > { %s32_s15 = sadd.s32 1, %s910_s13  ;;  %p810_p0 = scmp.ge.s32.totalorder %s914_s14, 1  ;;  %s914_s14 = sphi %s940_s14, %s13_s14   ;;  %s910_s13 = sphi %s938_s13, %s1234_s13   ;;  %s906_s12 = sphi %s936_s12, %s1233_s12  }
   0x3   : > { %p34_p1 = scmp.ge.s32.totalorder %s32_s15, 2  ;;  %p184_p2 = scmp.lt.s32.totalorder %s914_s14, 3 }
   0x5   : > { %s1236_s15 = smov (%p34_p1, %s32_s15), 0  ;;  %p185_p3 = pnand %p810_p0, %p184_p2 }
   0x6   : > { %p227_p4 = scmp.lt.s32.totalorder (!%p185_p3), %s906_s12, 1 }
   0x7   : > { %188 = sbr.rel (%p185_p3) target bundleno = 300 (0x12c), region = 32 }
   0xc   : > { %v336_v0 = vld [vmem:[%s1230_s1 + $0x78] sm:$0xff]  ;;  %v335_v1 = vld [vmem:[%s1230_s1 + $0x70] sm:$0xff]  ;;  %v334_v2 = vld [vmem:[%s1230_s1 + $0x68] sm:$0xff]  ;;  %s1238_s12 = smov (!%p227_p4, %s906_s12), 1 }
   0xd   : > { %820 = vmatpush.msra.mxu2 %v336_v0  ;;  %821 = vmatpush.msra.mxu3 %v336_v0  ;;  %v333_v3 = vld [vmem:[%s1230_s1 + $0x60] sm:$0xff]  ;;  %v332_v4 = vld [vmem:[%s1230_s1 + $0x58] sm:$0xff]  ;;  %v331_v5 = vld [vmem:[%s1230_s1 + $0x50] sm:$0xff]  ;;  %s817_s19 = sshll.u32 %s1238_s12, 9 }
   0xe   : > { %337 = vmatpush.msra.mxu0 %v336_v0  ;;  %819 = vmatpush.msra.mxu1 %v336_v0  ;;  %v330_v6 = vld [vmem:[%s1230_s1 + $0x48] sm:$0xff]  ;;  %v329_v7 = vld [vmem:[%s1230_s1 + $0x40] sm:$0xff]  ;;  %v328_v8 = vld [vmem:[%s1230_s1 + $0x38] sm:$0xff]  ;;  %s1011_s26 = scalar_lea.vmem %s1229_s0, %s817_s19  ;;  %s1090_s6 = scalar_lea.vmem %s1232_s3, %s817_s19 }
   0xf   : > { %823 = vmatpush.msra.mxu2 %v335_v1  ;;  %824 = vmatpush.msra.mxu3 %v335_v1  ;;  %v327_v9 = vld [vmem:[%s1230_s1 + $0x30] sm:$0xff]  ;;  %v326_v10 = vld [vmem:[%s1230_s1 + $0x28] sm:$0xff]  ;;  %v325_v11 = vld [vmem:[%s1230_s1 + $0x20] sm:$0xff] }
  0x10   : > { %338 = vmatpush.msra.mxu0 %v335_v1  ;;  %822 = vmatpush.msra.mxu1 %v335_v1  ;;  %v324_v12 = vld [vmem:[%s1230_s1 + $0x18] sm:$0xff]  ;;  %v323_v13 = vld [vmem:[%s1230_s1 + $0x10] sm:$0xff]  ;;  %v322_v14 = vld [vmem:[%s1230_s1 + $0x8] sm:$0xff] }
  0x11   : > { %826 = vmatpush.msra.mxu2 %v334_v2  ;;  %827 = vmatpush.msra.mxu3 %v334_v2  ;;  %v321_v15 = vld [vmem:[%s1230_s1] sm:$0xff]  ;;  %v290_v20 = vld [vmem:[%s1011_s26 + $0x108] sm:$0xff]  ;;  %v291_v24 = vld [vmem:[%s1011_s26 + $0x110] sm:$0xff] }
  0x12   : > { %339 = vmatpush.msra.mxu0 %v334_v2  ;;  %825 = vmatpush.msra.mxu1 %v334_v2  ;;  %v289_v16 = vld [vmem:[%s1011_s26 + $0x100] sm:$0xff]  ;;  %v306_v21 = vld [vmem:[%s1011_s26 + $0x188] sm:$0xff]  ;;  %v307_v25 = vld [vmem:[%s1011_s26 + $0x190] sm:$0xff] }
  0x13   : > { %829 = vmatpush.msra.mxu2 %v333_v3  ;;  %830 = vmatpush.msra.mxu3 %v333_v3  ;;  %v305_v17 = vld [vmem:[%s1011_s26 + $0x180] sm:$0xff]  ;;  %v258_v22 = vld [vmem:[%s1011_s26 + $0x8] sm:$0xff]  ;;  %v259_v26 = vld [vmem:[%s1011_s26 + $0x10] sm:$0xff] }
  0x14   : > { %340 = vmatpush.msra.mxu0 %v333_v3  ;;  %828 = vmatpush.msra.mxu1 %v333_v3  ;;  %v257_v18 = vld [vmem:[%s1011_s26] sm:$0xff]  ;;  %v274_v23 = vld [vmem:[%s1011_s26 + $0x88] sm:$0xff]  ;;  %v275_v27 = vld [vmem:[%s1011_s26 + $0x90] sm:$0xff] }
  0x15   : > { %832 = vmatpush.msra.mxu2 %v332_v4  ;;  %833 = vmatpush.msra.mxu3 %v332_v4  ;;  %v273_v19 = vld [vmem:[%s1011_s26 + $0x80] sm:$0xff]  ;;  %v292_v28 = vld [vmem:[%s1011_s26 + $0x118] sm:$0xff]  ;;  %v294_v36 = vld [vmem:[%s1011_s26 + $0x128] sm:$0xff] }
  0x16   : > { %341 = vmatpush.msra.mxu0 %v332_v4  ;;  %831 = vmatpush.msra.mxu1 %v332_v4  ;;  %v308_v29 = vld [vmem:[%s1011_s26 + $0x198] sm:$0xff]  ;;  %v293_v32 = vld [vmem:[%s1011_s26 + $0x120] sm:$0xff]  ;;  %v310_v37 = vld [vmem:[%s1011_s26 + $0x1a8] sm:$0xff] }
  0x17   : > { %835 = vmatpush.msra.mxu2 %v331_v5  ;;  %836 = vmatpush.msra.mxu3 %v331_v5  ;;  %v260_v30 = vld [vmem:[%s1011_s26 + $0x18] sm:$0xff]  ;;  %v309_v33 = vld [vmem:[%s1011_s26 + $0x1a0] sm:$0xff]  ;;  %v262_v38 = vld [vmem:[%s1011_s26 + $0x28] sm:$0xff] }
  0x18   : > { %342 = vmatpush.msra.mxu0 %v331_v5  ;;  %834 = vmatpush.msra.mxu1 %v331_v5  ;;  %v276_v31 = vld [vmem:[%s1011_s26 + $0x98] sm:$0xff]  ;;  %v261_v34 = vld [vmem:[%s1011_s26 + $0x20] sm:$0xff]  ;;  %v278_v39 = vld [vmem:[%s1011_s26 + $0xa8] sm:$0xff] }
  0x19   : > { %838 = vmatpush.msra.mxu2 %v330_v6  ;;  %839 = vmatpush.msra.mxu3 %v330_v6  ;;  %v277_v35 = vld [vmem:[%s1011_s26 + $0xa0] sm:$0xff]  ;;  %v295_v40 = vld [vmem:[%s1011_s26 + $0x130] sm:$0xff]  ;;  %v296_v44 = vld [vmem:[%s1011_s26 + $0x138] sm:$0xff] }
  0x1a   : > { %343 = vmatpush.msra.mxu0 %v330_v6  ;;  %837 = vmatpush.msra.mxu1 %v330_v6  ;;  %v311_v41 = vld [vmem:[%s1011_s26 + $0x1b0] sm:$0xff]  ;;  %v312_v45 = vld [vmem:[%s1011_s26 + $0x1b8] sm:$0xff]  ;;  %v297_v48 = vld [vmem:[%s1011_s26 + $0x140] sm:$0xff] }
  0x1b   : > { %841 = vmatpush.msra.mxu2 %v329_v7  ;;  %842 = vmatpush.msra.mxu3 %v329_v7  ;;  %v263_v42 = vld [vmem:[%s1011_s26 + $0x30] sm:$0xff]  ;;  %v264_v46 = vld [vmem:[%s1011_s26 + $0x38] sm:$0xff]  ;;  %v313_v49 = vld [vmem:[%s1011_s26 + $0x1c0] sm:$0xff] }
  0x1c   : > { %344 = vmatpush.msra.mxu0 %v329_v7  ;;  %840 = vmatpush.msra.mxu1 %v329_v7  ;;  %v279_v43 = vld [vmem:[%s1011_s26 + $0xb0] sm:$0xff]  ;;  %v280_v47 = vld [vmem:[%s1011_s26 + $0xb8] sm:$0xff]  ;;  %v265_v50 = vld [vmem:[%s1011_s26 + $0x40] sm:$0xff] }
  0x1d   : > { %844 = vmatpush.msra.mxu2 %v328_v8  ;;  %845 = vmatpush.msra.mxu3 %v328_v8  ;;  %v281_v51 = vld [vmem:[%s1011_s26 + $0xc0] sm:$0xff]  ;;  %v298_v52 = vld [vmem:[%s1011_s26 + $0x148] sm:$0xff]  ;;  %v299_v56 = vld [vmem:[%s1011_s26 + $0x150] sm:$0xff] }
  0x1e   : > { %345 = vmatpush.msra.mxu0 %v328_v8  ;;  %843 = vmatpush.msra.mxu1 %v328_v8  ;;  %v314_v53 = vld [vmem:[%s1011_s26 + $0x1c8] sm:$0xff]  ;;  %v315_v57 = vld [vmem:[%s1011_s26 + $0x1d0] sm:$0xff]  ;;  %v300_v60 = vld [vmem:[%s1011_s26 + $0x158] sm:$0xff] }
  0x1f   : > { %847 = vmatpush.msra.mxu2 %v327_v9  ;;  %848 = vmatpush.msra.mxu3 %v327_v9  ;;  %v266_v54 = vld [vmem:[%s1011_s26 + $0x48] sm:$0xff]  ;;  %v267_v58 = vld [vmem:[%s1011_s26 + $0x50] sm:$0xff]  ;;  %v316_v61 = vld [vmem:[%s1011_s26 + $0x1d8] sm:$0xff] }
  0x20   : > { %346 = vmatpush.msra.mxu0 %v327_v9  ;;  %846 = vmatpush.msra.mxu1 %v327_v9  ;;  %v282_v55 = vld [vmem:[%s1011_s26 + $0xc8] sm:$0xff]  ;;  %v283_v59 = vld [vmem:[%s1011_s26 + $0xd0] sm:$0xff]  ;;  %v268_v62 = vld [vmem:[%s1011_s26 + $0x58] sm:$0xff] }
  0x21   : > { %850 = vmatpush.msra.mxu2 %v326_v10  ;;  %851 = vmatpush.msra.mxu3 %v326_v10  ;;  %v284_v63 = vld [vmem:[%s1011_s26 + $0xd8] sm:$0xff]  ;;  %v301_v0 = vld [vmem:[%s1011_s26 + $0x160] sm:$0xff]  ;;  %v302_v4 = vld [vmem:[%s1011_s26 + $0x168] sm:$0xff] }
  0x22   : > { %347 = vmatpush.msra.mxu0 %v326_v10  ;;  %849 = vmatpush.msra.mxu1 %v326_v10  ;;  %v317_v1 = vld [vmem:[%s1011_s26 + $0x1e0] sm:$0xff]  ;;  %v318_v5 = vld [vmem:[%s1011_s26 + $0x1e8] sm:$0xff]  ;;  %v303_v8 = vld [vmem:[%s1011_s26 + $0x170] sm:$0xff] }
  0x23   : > { %853 = vmatpush.msra.mxu2 %v325_v11  ;;  %854 = vmatpush.msra.mxu3 %v325_v11  ;;  %v269_v2 = vld [vmem:[%s1011_s26 + $0x60] sm:$0xff]  ;;  %v270_v6 = vld [vmem:[%s1011_s26 + $0x68] sm:$0xff]  ;;  %v319_v9 = vld [vmem:[%s1011_s26 + $0x1f0] sm:$0xff] }
  0x24   : > { %348 = vmatpush.msra.mxu0 %v325_v11  ;;  %852 = vmatpush.msra.mxu1 %v325_v11  ;;  %v285_v3 = vld [vmem:[%s1011_s26 + $0xe0] sm:$0xff]  ;;  %v286_v7 = vld [vmem:[%s1011_s26 + $0xe8] sm:$0xff]  ;;  %v271_v10 = vld [vmem:[%s1011_s26 + $0x70] sm:$0xff] }
  0x25   : > { %856 = vmatpush.msra.mxu2 %v324_v12  ;;  %857 = vmatpush.msra.mxu3 %v324_v12  ;;  %v287_v11 = vld [vmem:[%s1011_s26 + $0xf0] sm:$0xff] }
  0x26   : > { %349 = vmatpush.msra.mxu0 %v324_v12  ;;  %855 = vmatpush.msra.mxu1 %v324_v12  ;;  %v304_v12 = vld [vmem:[%s1011_s26 + $0x178] sm:$0xff] }
  0x27   : > { %859 = vmatpush.msra.mxu2 %v323_v13  ;;  %860 = vmatpush.msra.mxu3 %v323_v13 }
  0x28   : > { %350 = vmatpush.msra.mxu0 %v323_v13  ;;  %858 = vmatpush.msra.mxu1 %v323_v13  ;;  %v320_v13 = vld [vmem:[%s1011_s26 + $0x1f8] sm:$0xff] }
  0x29   : > { %862 = vmatpush.msra.mxu2 %v322_v14  ;;  %863 = vmatpush.msra.mxu3 %v322_v14 }
  0x2a   : > { %351 = vmatpush.msra.mxu0 %v322_v14  ;;  %861 = vmatpush.msra.mxu1 %v322_v14  ;;  %v272_v14 = vld [vmem:[%s1011_s26 + $0x78] sm:$0xff] }
  0x2b   : > { %865 = vmatpush.msra.mxu2 %v321_v15  ;;  %866 = vmatpush.msra.mxu3 %v321_v15 }
  0x2c   : > { %449 = vmatmul.f32.vlgmr.msra.gmra.mxu2 %v289_v16  ;;  %497 = vmatmul.f32.vlgmr.msra.gmra.mxu3 %v305_v17  ;;  %v1083_v16 = vld [vmem:[%s1231_s2] ss:$0 sm:$0xff] }
  0x2d   : > { %352 = vmatpush.msra.mxu0 %v321_v15  ;;  %864 = vmatpush.msra.mxu1 %v321_v15  ;;  %v288_v15 = vld [vmem:[%s1011_s26 + $0xf8] sm:$0xff] }
  0x2e   : > { %353 = vmatmul.f32.vlgmr.msra.gmra.mxu0 %v257_v18  ;;  %401 = vmatmul.f32.vlgmr.msra.gmra.mxu1 %v273_v19 }
  0x34   : > { %452 = vmatmul.f32.gmra.mxu2 %v290_v20  ;;  %500 = vmatmul.f32.gmra.mxu3 %v306_v21 }
  0x36   : > { %356 = vmatmul.f32.gmra.mxu0 %v258_v22  ;;  %404 = vmatmul.f32.gmra.mxu1 %v274_v23 }
  0x3c   : > { %455 = vmatmul.f32.gmra.mxu2 %v291_v24  ;;  %503 = vmatmul.f32.gmra.mxu3 %v307_v25 }
  0x3e   : > { %359 = vmatmul.f32.gmra.mxu0 %v259_v26  ;;  %407 = vmatmul.f32.gmra.mxu1 %v275_v27 }
  0x44   : > { %458 = vmatmul.f32.gmra.mxu2 %v292_v28  ;;  %506 = vmatmul.f32.gmra.mxu3 %v308_v29 }
  0x46   : > { %362 = vmatmul.f32.gmra.mxu0 %v260_v30  ;;  %410 = vmatmul.f32.gmra.mxu1 %v276_v31 }
  0x4c   : > { %461 = vmatmul.f32.gmra.mxu2 %v293_v32  ;;  %509 = vmatmul.f32.gmra.mxu3 %v309_v33 }
  0x4e   : > { %365 = vmatmul.f32.gmra.mxu0 %v261_v34  ;;  %413 = vmatmul.f32.gmra.mxu1 %v277_v35 }
  0x54   : > { %464 = vmatmul.f32.gmra.mxu2 %v294_v36  ;;  %512 = vmatmul.f32.gmra.mxu3 %v310_v37 }
  0x56   : > { %368 = vmatmul.f32.gmra.mxu0 %v262_v38  ;;  %416 = vmatmul.f32.gmra.mxu1 %v278_v39 }
  0x5c   : > { %467 = vmatmul.f32.gmra.mxu2 %v295_v40  ;;  %515 = vmatmul.f32.gmra.mxu3 %v311_v41 }
  0x5e   : > { %371 = vmatmul.f32.gmra.mxu0 %v263_v42  ;;  %419 = vmatmul.f32.gmra.mxu1 %v279_v43 }
  0x64   : > { %470 = vmatmul.f32.gmra.mxu2 %v296_v44  ;;  %518 = vmatmul.f32.gmra.mxu3 %v312_v45 }
  0x66   : > { %374 = vmatmul.f32.gmra.mxu0 %v264_v46  ;;  %422 = vmatmul.f32.gmra.mxu1 %v280_v47 }
  0x6c   : > { %473 = vmatmul.f32.gmra.mxu2 %v297_v48  ;;  %521 = vmatmul.f32.gmra.mxu3 %v313_v49 }
  0x6e   : > { %377 = vmatmul.f32.gmra.mxu0 %v265_v50  ;;  %425 = vmatmul.f32.gmra.mxu1 %v281_v51 }
  0x74   : > { %476 = vmatmul.f32.gmra.mxu2 %v298_v52  ;;  %524 = vmatmul.f32.gmra.mxu3 %v314_v53 }
  0x76   : > { %380 = vmatmul.f32.gmra.mxu0 %v266_v54  ;;  %428 = vmatmul.f32.gmra.mxu1 %v282_v55 }
  0x7c   : > { %479 = vmatmul.f32.gmra.mxu2 %v299_v56  ;;  %527 = vmatmul.f32.gmra.mxu3 %v315_v57 }
  0x7e   : > { %383 = vmatmul.f32.gmra.mxu0 %v267_v58  ;;  %431 = vmatmul.f32.gmra.mxu1 %v283_v59 }
  0x84   : > { %482 = vmatmul.f32.gmra.mxu2 %v300_v60  ;;  %530 = vmatmul.f32.gmra.mxu3 %v316_v61 }
  0x86   : > { %386 = vmatmul.f32.gmra.mxu0 %v268_v62  ;;  %434 = vmatmul.f32.gmra.mxu1 %v284_v63 }
  0x8c   : > { %485 = vmatmul.f32.gmra.mxu2 %v301_v0  ;;  %533 = vmatmul.f32.gmra.mxu3 %v317_v1 }
  0x8e   : > { %389 = vmatmul.f32.gmra.mxu0 %v269_v2  ;;  %437 = vmatmul.f32.gmra.mxu1 %v285_v3 }
  0x94   : > { %488 = vmatmul.f32.gmra.mxu2 %v302_v4  ;;  %536 = vmatmul.f32.gmra.mxu3 %v318_v5 }
  0x96   : > { %392 = vmatmul.f32.gmra.mxu0 %v270_v6  ;;  %440 = vmatmul.f32.gmra.mxu1 %v286_v7 }
  0x9c   : > { %491 = vmatmul.f32.gmra.mxu2 %v303_v8  ;;  %539 = vmatmul.f32.gmra.mxu3 %v319_v9 }
  0x9e   : > { %395 = vmatmul.f32.gmra.mxu0 %v271_v10  ;;  %443 = vmatmul.f32.gmra.mxu1 %v287_v11 }
  0xa4   : > { %494 = vmatmul.f32.gmra.mxu2 %v304_v12  ;;  %542 = vmatmul.f32.gmra.mxu3 %v320_v13 }
  0xa6   : > { %398 = vmatmul.f32.gmra.mxu0 %v272_v14  ;;  %446 = vmatmul.f32.gmra.mxu1 %v288_v15 }
  0xab   : > { %v354_v17 = vpop.f32.mrf.mxu0  ;;  %v402_v18 = vpop.f32.mrf.mxu1 }
  0xac   : > { %v549_v19 = vadd.f32 %v1083_v16, %v354_v17  ;;  %v565_v20 = vadd.f32 %v1083_v16, %v402_v18 }
  0xae   : > { %613 = vst [vmem:[%s1090_s6] sm:$0xff] %v549_v19 }
  0xaf   : > { %629 = vst [vmem:[%s1090_s6 + $0x80] sm:$0xff] %v565_v20  ;;  %v450_v21 = vpop.f32.mrf.mxu2  ;;  %v498_v22 = vpop.f32.mrf.mxu3 }
  0xb0   : > { %v581_v23 = vadd.f32 %v1083_v16, %v450_v21  ;;  %v597_v24 = vadd.f32 %v1083_v16, %v498_v22 }
  0xb2   : > { %645 = vst [vmem:[%s1090_s6 + $0x100] sm:$0xff] %v581_v23 }
  0xb3   : > { %661 = vst [vmem:[%s1090_s6 + $0x180] sm:$0xff] %v597_v24  ;;  %v357_v25 = vpop.f32.mrf.mxu0  ;;  %v405_v26 = vpop.f32.mrf.mxu1 }
  0xb4   : > { %v550_v27 = vadd.f32 %v1083_v16, %v357_v25  ;;  %v566_v28 = vadd.f32 %v1083_v16, %v405_v26 }
  0xb6   : > { %614 = vst [vmem:[%s1090_s6 + $0x8] sm:$0xff] %v550_v27 }
  0xb7   : > { %630 = vst [vmem:[%s1090_s6 + $0x88] sm:$0xff] %v566_v28  ;;  %v453_v29 = vpop.f32.mrf.mxu2  ;;  %v501_v30 = vpop.f32.mrf.mxu3 }
  0xb8   : > { %v582_v31 = vadd.f32 %v1083_v16, %v453_v29  ;;  %v598_v32 = vadd.f32 %v1083_v16, %v501_v30 }
  0xba   : > { %646 = vst [vmem:[%s1090_s6 + $0x108] sm:$0xff] %v582_v31 }
  0xbb   : > { %662 = vst [vmem:[%s1090_s6 + $0x188] sm:$0xff] %v598_v32  ;;  %v360_v33 = vpop.f32.mrf.mxu0  ;;  %v408_v34 = vpop.f32.mrf.mxu1 }
  0xbc   : > { %v551_v35 = vadd.f32 %v1083_v16, %v360_v33  ;;  %v567_v36 = vadd.f32 %v1083_v16, %v408_v34 }
  0xbe   : > { %615 = vst [vmem:[%s1090_s6 + $0x10] sm:$0xff] %v551_v35 }
  0xbf   : > { %631 = vst [vmem:[%s1090_s6 + $0x90] sm:$0xff] %v567_v36  ;;  %v456_v37 = vpop.f32.mrf.mxu2  ;;  %v504_v38 = vpop.f32.mrf.mxu3 }
  0xc0   : > { %v583_v39 = vadd.f32 %v1083_v16, %v456_v37  ;;  %v599_v40 = vadd.f32 %v1083_v16, %v504_v38 }
  0xc2   : > { %647 = vst [vmem:[%s1090_s6 + $0x110] sm:$0xff] %v583_v39 }
  0xc3   : > { %663 = vst [vmem:[%s1090_s6 + $0x190] sm:$0xff] %v599_v40  ;;  %v363_v41 = vpop.f32.mrf.mxu0  ;;  %v411_v42 = vpop.f32.mrf.mxu1 }
  0xc4   : > { %v552_v43 = vadd.f32 %v1083_v16, %v363_v41  ;;  %v568_v44 = vadd.f32 %v1083_v16, %v411_v42 }
  0xc6   : > { %616 = vst [vmem:[%s1090_s6 + $0x18] sm:$0xff] %v552_v43 }
  0xc7   : > { %632 = vst [vmem:[%s1090_s6 + $0x98] sm:$0xff] %v568_v44  ;;  %v459_v45 = vpop.f32.mrf.mxu2  ;;  %v507_v46 = vpop.f32.mrf.mxu3 }
  0xc8   : > { %v584_v47 = vadd.f32 %v1083_v16, %v459_v45  ;;  %v600_v48 = vadd.f32 %v1083_v16, %v507_v46 }
  0xca   : > { %648 = vst [vmem:[%s1090_s6 + $0x118] sm:$0xff] %v584_v47 }
  0xcb   : > { %664 = vst [vmem:[%s1090_s6 + $0x198] sm:$0xff] %v600_v48  ;;  %v366_v49 = vpop.f32.mrf.mxu0  ;;  %v414_v50 = vpop.f32.mrf.mxu1 }
  0xcc   : > { %v553_v51 = vadd.f32 %v1083_v16, %v366_v49  ;;  %v569_v52 = vadd.f32 %v1083_v16, %v414_v50 }
  0xce   : > { %617 = vst [vmem:[%s1090_s6 + $0x20] sm:$0xff] %v553_v51 }
  0xcf   : > { %633 = vst [vmem:[%s1090_s6 + $0xa0] sm:$0xff] %v569_v52  ;;  %v462_v53 = vpop.f32.mrf.mxu2  ;;  %v510_v54 = vpop.f32.mrf.mxu3 }
  0xd0   : > { %v585_v55 = vadd.f32 %v1083_v16, %v462_v53  ;;  %v601_v56 = vadd.f32 %v1083_v16, %v510_v54 }
  0xd2   : > { %649 = vst [vmem:[%s1090_s6 + $0x120] sm:$0xff] %v585_v55 }
  0xd3   : > { %665 = vst [vmem:[%s1090_s6 + $0x1a0] sm:$0xff] %v601_v56  ;;  %v369_v57 = vpop.f32.mrf.mxu0  ;;  %v417_v58 = vpop.f32.mrf.mxu1 }
  0xd4   : > { %v554_v59 = vadd.f32 %v1083_v16, %v369_v57  ;;  %v570_v60 = vadd.f32 %v1083_v16, %v417_v58 }
  0xd6   : > { %618 = vst [vmem:[%s1090_s6 + $0x28] sm:$0xff] %v554_v59 }
  0xd7   : > { %634 = vst [vmem:[%s1090_s6 + $0xa8] sm:$0xff] %v570_v60  ;;  %v465_v61 = vpop.f32.mrf.mxu2  ;;  %v513_v62 = vpop.f32.mrf.mxu3 }
  0xd8   : > { %v586_v63 = vadd.f32 %v1083_v16, %v465_v61  ;;  %v602_v0 = vadd.f32 %v1083_v16, %v513_v62 }
  0xda   : > { %650 = vst [vmem:[%s1090_s6 + $0x128] sm:$0xff] %v586_v63 }
  0xdb   : > { %666 = vst [vmem:[%s1090_s6 + $0x1a8] sm:$0xff] %v602_v0  ;;  %v372_v1 = vpop.f32.mrf.mxu0  ;;  %v420_v2 = vpop.f32.mrf.mxu1 }
  0xdc   : > { %v555_v3 = vadd.f32 %v1083_v16, %v372_v1  ;;  %v571_v4 = vadd.f32 %v1083_v16, %v420_v2 }
  0xde   : > { %619 = vst [vmem:[%s1090_s6 + $0x30] sm:$0xff] %v555_v3 }
  0xdf   : > { %635 = vst [vmem:[%s1090_s6 + $0xb0] sm:$0xff] %v571_v4  ;;  %v468_v5 = vpop.f32.mrf.mxu2  ;;  %v516_v6 = vpop.f32.mrf.mxu3 }
  0xe0   : > { %v587_v7 = vadd.f32 %v1083_v16, %v468_v5  ;;  %v603_v8 = vadd.f32 %v1083_v16, %v516_v6 }
  0xe2   : > { %651 = vst [vmem:[%s1090_s6 + $0x130] sm:$0xff] %v587_v7 }
  0xe3   : > { %667 = vst [vmem:[%s1090_s6 + $0x1b0] sm:$0xff] %v603_v8  ;;  %v375_v9 = vpop.f32.mrf.mxu0  ;;  %v423_v10 = vpop.f32.mrf.mxu1 }
  0xe4   : > { %v556_v11 = vadd.f32 %v1083_v16, %v375_v9  ;;  %v572_v12 = vadd.f32 %v1083_v16, %v423_v10 }
  0xe6   : > { %620 = vst [vmem:[%s1090_s6 + $0x38] sm:$0xff] %v556_v11 }
  0xe7   : > { %636 = vst [vmem:[%s1090_s6 + $0xb8] sm:$0xff] %v572_v12  ;;  %v471_v13 = vpop.f32.mrf.mxu2  ;;  %v519_v14 = vpop.f32.mrf.mxu3 }
  0xe8   : > { %v588_v15 = vadd.f32 %v1083_v16, %v471_v13  ;;  %v604_v17 = vadd.f32 %v1083_v16, %v519_v14 }
  0xea   : > { %652 = vst [vmem:[%s1090_s6 + $0x138] sm:$0xff] %v588_v15 }
  0xeb   : > { %668 = vst [vmem:[%s1090_s6 + $0x1b8] sm:$0xff] %v604_v17  ;;  %v378_v18 = vpop.f32.mrf.mxu0  ;;  %v426_v19 = vpop.f32.mrf.mxu1 }
  0xec   : > { %v557_v20 = vadd.f32 %v1083_v16, %v378_v18  ;;  %v573_v21 = vadd.f32 %v1083_v16, %v426_v19 }
  0xee   : > { %621 = vst [vmem:[%s1090_s6 + $0x40] sm:$0xff] %v557_v20 }
  0xef   : > { %637 = vst [vmem:[%s1090_s6 + $0xc0] sm:$0xff] %v573_v21  ;;  %v474_v22 = vpop.f32.mrf.mxu2  ;;  %v522_v23 = vpop.f32.mrf.mxu3 }
  0xf0   : > { %v589_v24 = vadd.f32 %v1083_v16, %v474_v22  ;;  %v605_v25 = vadd.f32 %v1083_v16, %v522_v23 }
  0xf2   : > { %653 = vst [vmem:[%s1090_s6 + $0x140] sm:$0xff] %v589_v24 }
  0xf3   : > { %669 = vst [vmem:[%s1090_s6 + $0x1c0] sm:$0xff] %v605_v25  ;;  %v381_v26 = vpop.f32.mrf.mxu0  ;;  %v429_v27 = vpop.f32.mrf.mxu1 }
  0xf4   : > { %v558_v28 = vadd.f32 %v1083_v16, %v381_v26  ;;  %v574_v29 = vadd.f32 %v1083_v16, %v429_v27 }
  0xf6   : > { %622 = vst [vmem:[%s1090_s6 + $0x48] sm:$0xff] %v558_v28 }
  0xf7   : > { %638 = vst [vmem:[%s1090_s6 + $0xc8] sm:$0xff] %v574_v29  ;;  %v477_v30 = vpop.f32.mrf.mxu2  ;;  %v525_v31 = vpop.f32.mrf.mxu3 }
  0xf8   : > { %v590_v32 = vadd.f32 %v1083_v16, %v477_v30  ;;  %v606_v33 = vadd.f32 %v1083_v16, %v525_v31 }
  0xfa   : > { %654 = vst [vmem:[%s1090_s6 + $0x148] sm:$0xff] %v590_v32 }
  0xfb   : > { %670 = vst [vmem:[%s1090_s6 + $0x1c8] sm:$0xff] %v606_v33  ;;  %v384_v34 = vpop.f32.mrf.mxu0  ;;  %v432_v35 = vpop.f32.mrf.mxu1 }
  0xfc   : > { %v559_v36 = vadd.f32 %v1083_v16, %v384_v34  ;;  %v575_v37 = vadd.f32 %v1083_v16, %v432_v35 }
  0xfe   : > { %623 = vst [vmem:[%s1090_s6 + $0x50] sm:$0xff] %v559_v36 }
  0xff   : > { %639 = vst [vmem:[%s1090_s6 + $0xd0] sm:$0xff] %v575_v37  ;;  %v480_v38 = vpop.f32.mrf.mxu2  ;;  %v528_v39 = vpop.f32.mrf.mxu3 }
 0x100   : > { %v591_v40 = vadd.f32 %v1083_v16, %v480_v38  ;;  %v607_v41 = vadd.f32 %v1083_v16, %v528_v39 }
 0x102   : > { %655 = vst [vmem:[%s1090_s6 + $0x150] sm:$0xff] %v591_v40 }
 0x103   : > { %671 = vst [vmem:[%s1090_s6 + $0x1d0] sm:$0xff] %v607_v41  ;;  %v387_v42 = vpop.f32.mrf.mxu0  ;;  %v435_v43 = vpop.f32.mrf.mxu1 }
 0x104   : > { %v560_v44 = vadd.f32 %v1083_v16, %v387_v42  ;;  %v576_v45 = vadd.f32 %v1083_v16, %v435_v43 }
 0x106   : > { %624 = vst [vmem:[%s1090_s6 + $0x58] sm:$0xff] %v560_v44 }
 0x107   : > { %640 = vst [vmem:[%s1090_s6 + $0xd8] sm:$0xff] %v576_v45  ;;  %v483_v46 = vpop.f32.mrf.mxu2  ;;  %v531_v47 = vpop.f32.mrf.mxu3 }
 0x108   : > { %v592_v48 = vadd.f32 %v1083_v16, %v483_v46  ;;  %v608_v49 = vadd.f32 %v1083_v16, %v531_v47 }
 0x10a   : > { %656 = vst [vmem:[%s1090_s6 + $0x158] sm:$0xff] %v592_v48 }
 0x10b   : > { %672 = vst [vmem:[%s1090_s6 + $0x1d8] sm:$0xff] %v608_v49  ;;  %v390_v50 = vpop.f32.mrf.mxu0  ;;  %v438_v51 = vpop.f32.mrf.mxu1 }
 0x10c   : > { %v561_v52 = vadd.f32 %v1083_v16, %v390_v50  ;;  %v577_v53 = vadd.f32 %v1083_v16, %v438_v51 }
 0x10e   : > { %625 = vst [vmem:[%s1090_s6 + $0x60] sm:$0xff] %v561_v52 }
 0x10f   : > { %641 = vst [vmem:[%s1090_s6 + $0xe0] sm:$0xff] %v577_v53  ;;  %v486_v54 = vpop.f32.mrf.mxu2  ;;  %v534_v55 = vpop.f32.mrf.mxu3 }
 0x110   : > { %v593_v56 = vadd.f32 %v1083_v16, %v486_v54  ;;  %v609_v57 = vadd.f32 %v1083_v16, %v534_v55 }
 0x112   : > { %657 = vst [vmem:[%s1090_s6 + $0x160] sm:$0xff] %v593_v56 }
 0x113   : > { %673 = vst [vmem:[%s1090_s6 + $0x1e0] sm:$0xff] %v609_v57  ;;  %v393_v58 = vpop.f32.mrf.mxu0  ;;  %v441_v59 = vpop.f32.mrf.mxu1 }
 0x114   : > { %v562_v60 = vadd.f32 %v1083_v16, %v393_v58  ;;  %v578_v61 = vadd.f32 %v1083_v16, %v441_v59 }
 0x116   : > { %626 = vst [vmem:[%s1090_s6 + $0x68] sm:$0xff] %v562_v60 }
 0x117   : > { %642 = vst [vmem:[%s1090_s6 + $0xe8] sm:$0xff] %v578_v61  ;;  %v489_v62 = vpop.f32.mrf.mxu2  ;;  %v537_v63 = vpop.f32.mrf.mxu3 }
 0x118   : > { %v594_v0 = vadd.f32 %v1083_v16, %v489_v62  ;;  %v610_v1 = vadd.f32 %v1083_v16, %v537_v63 }
 0x11a   : > { %658 = vst [vmem:[%s1090_s6 + $0x168] sm:$0xff] %v594_v0 }
 0x11b   : > { %674 = vst [vmem:[%s1090_s6 + $0x1e8] sm:$0xff] %v610_v1  ;;  %v396_v2 = vpop.f32.mrf.mxu0  ;;  %v444_v3 = vpop.f32.mrf.mxu1 }
 0x11c   : > { %v563_v4 = vadd.f32 %v1083_v16, %v396_v2  ;;  %v579_v5 = vadd.f32 %v1083_v16, %v444_v3 }
 0x11e   : > { %627 = vst [vmem:[%s1090_s6 + $0x70] sm:$0xff] %v563_v4 }
 0x11f   : > { %643 = vst [vmem:[%s1090_s6 + $0xf0] sm:$0xff] %v579_v5  ;;  %v492_v6 = vpop.f32.mrf.mxu2  ;;  %v540_v7 = vpop.f32.mrf.mxu3 }
 0x120   : > { %v595_v8 = vadd.f32 %v1083_v16, %v492_v6  ;;  %v611_v9 = vadd.f32 %v1083_v16, %v540_v7 }
 0x122   : > { %659 = vst [vmem:[%s1090_s6 + $0x170] sm:$0xff] %v595_v8 }
 0x123   : > { %675 = vst [vmem:[%s1090_s6 + $0x1f0] sm:$0xff] %v611_v9  ;;  %v399_v10 = vpop.f32.mrf.mxu0  ;;  %v447_v11 = vpop.f32.mrf.mxu1 }
 0x124   : > { %v564_v12 = vadd.f32 %v1083_v16, %v399_v10  ;;  %v580_v13 = vadd.f32 %v1083_v16, %v447_v11 }
 0x126   : > { %628 = vst [vmem:[%s1090_s6 + $0x78] sm:$0xff] %v564_v12 }
 0x127   : > { %644 = vst [vmem:[%s1090_s6 + $0xf8] sm:$0xff] %v580_v13  ;;  %v495_v14 = vpop.f32.mrf.mxu2  ;;  %v543_v15 = vpop.f32.mrf.mxu3 }
 0x128   : > { %v596_v17 = vadd.f32 %v1083_v16, %v495_v14  ;;  %v612_v18 = vadd.f32 %v1083_v16, %v543_v15 }
 0x12a   : > { %660 = vst [vmem:[%s1090_s6 + $0x178] sm:$0xff] %v596_v17 }
 0x12b   : > { %676 = vst [vmem:[%s1090_s6 + $0x1f8] sm:$0xff] %v612_v18 }
 0x12c PF: > { %s13_s14 = sadd.s32 1, %s914_s14   ;;  %s1233_s12 = smov %s910_s13 }
 0x12d   : > { %p10_p5 = scmp.ge.s32.totalorder %s13_s14, 4   ;;  %s1234_s13 = smov %s1236_s15 }
 0x12f   :  { %12 = sbr.rel (!%p10_p5) target bundleno = 2 (0x2), region = 68 }

</bundles_post_ra>
